<compile_context>
chip_gen: v7x
topology: tpu7x:2x2x1
jax: 0.10.0
libtpu: 0.0.40
codegen_flags: <defaults>
</compile_context>

<pallas_src>
import jax
import jax.numpy as jnp
from jax.experimental import pallas as pl
from jax.experimental.pallas import tpu as pltpu


_LANE = 128            # lane width
_MAX_TILE_ROWS = 1024  # 1024 rows x 128 lanes = 131072 elements per block


def _round_up(x, m):
    return ((x + m - 1) // m) * m


def _cdiv(a, b):
    return (a + b - 1) // b


def _choose_tile_rows(rows, max_tile_rows):
    """Pick a sublane-row tile: multiple of 8, capped, and >=2 grid steps when possible."""
    if rows <= 8:
        return rows                      # single (full-extent) block
    # aim for at least 2 grid steps so v7x's two TensorCores both get work
    target = _round_up(_cdiv(rows, 2), 8)
    return max(8, min(max_tile_rows, target))


def _cann_kernel(params_ref, f_ref, out_ref):
    # params_ref: SMEM (4,)                  -> a0, a1, b0, b1
    # f_ref:      VMEM (4, TILE_ROWS, 128)   -> F00, F01, F10, F11 slabs, batch dense
    # out_ref:    VMEM (TILE_ROWS, 128)      -> dense, unmasked stores
    a0 = params_ref[0]
    a1 = params_ref[1]
    b0 = params_ref[2]
    b1 = params_ref[3]

    f00 = f_ref[0]                 # (TILE_ROWS, 128)
    f01 = f_ref[1]
    f10 = f_ref[2]
    f11 = f_ref[3]

    # I1 - 2 = trace(F^T F) - 2  (sum of squares of F entries), pairwise adds.
    i1m2 = (f00 * f00 + f01 * f01) + (f10 * f10 + f11 * f11) - 2.0
    # J - 1 = det(F) - 1
    jm1 = f00 * f11 - f01 * f10 - 1.0

    # a0*i1m2 + b0*i1m2^2 + a1*jm1^2 + b1*jm1 (factored Horner form)
    out_ref[...] = i1m2 * (a0 + b0 * i1m2) + jm1 * (b1 + a1 * jm1)


def cann_simple_forward_soa(f_soa, params, *, max_tile_rows=_MAX_TILE_ROWS):
    """f_soa: (4, rows, 128) float32 packed F components; params: (4,) float32.

    Returns (rows, 128) float32 energies (caller slices the valid batch range).
    """
    rows = f_soa.shape[1]
    tile_rows = _choose_tile_rows(rows, max_tile_rows)
    grid = (_cdiv(rows, tile_rows),)

    return pl.pallas_call(
        _cann_kernel,
        out_shape=jax.ShapeDtypeStruct((rows, _LANE), jnp.float32),
        grid_spec=pltpu.PrefetchScalarGridSpec(
            num_scalar_prefetch=1,                                 # params -> SMEM
            grid=grid,
            in_specs=[
                pl.BlockSpec((4, tile_rows, _LANE), lambda i, params: (0, i, 0)),
            ],
            out_specs=pl.BlockSpec((tile_rows, _LANE), lambda i, params: (i, 0)),
        ),
        compiler_params=pltpu.CompilerParams(
            dimension_semantics=("parallel",),                     # megacore-shardable batch
            vmem_limit_bytes=32 * 1024 * 1024,
        ),
    )(params, f_soa)


def cann_simple_forward(F, a, b, *, max_tile_rows=_MAX_TILE_ROWS):
    """F: (B, 2, 2) float32 ; a, b: (2,) float32 each. Returns (B,) float32."""
    # --- parameter thresholding (glue, matches torch parameters_to_vector logic) ---
    params = jnp.concatenate([a, b]).astype(jnp.float32)          # (4,) = [a0, a1, b0, b1]
    thresh = jnp.max(params) * 0.001
    params = jnp.where(params < thresh, jnp.zeros_like(params), params)

    B = F.shape[0]
    b_pad = _round_up(B, _LANE)                                    # pad only to 128 (tiny)
    f_flat = F.reshape(B, 4).astype(jnp.float32)                   # free reshape, row-major
    if b_pad != B:
        f_flat = jnp.pad(f_flat, ((0, b_pad - B), (0, 0)))
    rows = b_pad // _LANE
    # Single fused pad+transpose copy into SoA (4, rows, 128): components on the
    # leading axis, batch dense on (sublane, lane).
    f_soa = f_flat.T.reshape(4, rows, _LANE)

    out = cann_simple_forward_soa(f_soa, params, max_tile_rows=max_tile_rows)
    return out.reshape(b_pad)[:B]


def _reference(F, a, b):
    params = jnp.concatenate([a, b]).astype(jnp.float32)
    thresh = jnp.max(params) * 0.001
    params = jnp.where(params < thresh, jnp.zeros_like(params), params)
    a0, a1, b0, b1 = params[0], params[1], params[2], params[3]
    C = jnp.einsum('bij,bik->bjk', F, F)          # F^T F
    I1 = jnp.trace(C, axis1=1, axis2=2)
    J = jnp.linalg.det(F)
    return a0 * (I1 - 2) + a1 * (J - 1) ** 2 + b0 * (I1 - 2) ** 2 + b1 * (J - 1)


if __name__ == "__main__":
    key = jax.random.PRNGKey(0)
    a = jnp.array([10.0, 10.0], dtype=jnp.float32)
    b = jnp.array([10.0, 10.0], dtype=jnp.float32)
    eye = jnp.eye(2, dtype=jnp.float32)[None, :, :]

    # small batch (exercises padding 8 -> 128, single full-extent block)
    B1 = 8
    F1 = eye + 0.1 * jax.random.normal(key, (B1, 2, 2), dtype=jnp.float32)
    out1 = jax.block_until_ready(cann_simple_forward(F1, a, b))
    ref1 = _reference(F1, a, b)
    assert out1.shape == (B1,)
    assert jnp.allclose(out1, ref1, rtol=1e-5, atol=1e-5), (out1, ref1)

    # non-multiple-of-128 batch (padding + valid-range slicing, rows < 8)
    B2 = 517
    F2 = eye + 0.1 * jax.random.normal(jax.random.PRNGKey(1), (B2, 2, 2), dtype=jnp.float32)
    out2 = jax.block_until_ready(cann_simple_forward(F2, a, b))
    ref2 = _reference(F2, a, b)
    assert out2.shape == (B2,)
    assert jnp.allclose(out2, ref2, rtol=1e-5, atol=1e-5)

    # larger batch: multi-step grid with a partial last block (rows=33 -> tiles of 24)
    B3 = 4109
    F3 = eye + 0.1 * jax.random.normal(jax.random.PRNGKey(2), (B3, 2, 2), dtype=jnp.float32)
    out3 = jax.block_until_ready(cann_simple_forward(F3, a, b))
    ref3 = _reference(F3, a, b)
    assert out3.shape == (B3,)
    assert jnp.allclose(out3, ref3, rtol=1e-5, atol=1e-5)

    print("KERNEL_OK")
</pallas_src>

<mosaic_0001>
module attributes {stable_mosaic.version = 11 : i64} {
  func.func @_cann_kernel(%arg0: i32, %arg1: memref<4xf32, #tpu.memory_space<smem>>, %arg2: memref<4x1x128xf32, #tpu.memory_space<vmem>>, %arg3: memref<1x128xf32, #tpu.memory_space<vmem>>) attributes {dimension_semantics = [#tpu.dimension_semantics<parallel>], iteration_bounds = array<i64: 1>, scalar_prefetch = 1 : i64, scratch_operands = 0 : i64, tpu.core_type = #tpu.core_type<tc>, window_params = [{transform_indices = @transform_0, window_bounds = array<i64: 4, 1, 128>}, {transform_indices = @transform_1, window_bounds = array<i64: 1, 128>}]} {
    %c0 = arith.constant 0 : index
    %0 = memref.load %arg1[%c0] : memref<4xf32, #tpu.memory_space<smem>>
    %c1 = arith.constant 1 : index
    %1 = memref.load %arg1[%c1] : memref<4xf32, #tpu.memory_space<smem>>
    %c2 = arith.constant 2 : index
    %2 = memref.load %arg1[%c2] : memref<4xf32, #tpu.memory_space<smem>>
    %c3 = arith.constant 3 : index
    %3 = memref.load %arg1[%c3] : memref<4xf32, #tpu.memory_space<smem>>
    %c0_0 = arith.constant 0 : index
    %c0_1 = arith.constant 0 : index
    %c0_2 = arith.constant 0 : index
    %4 = vector.load %arg2[%c0_0, %c0_1, %c0_2] : memref<4x1x128xf32, #tpu.memory_space<vmem>>, vector<1x1x128xf32>
    %5 = vector.shape_cast %4 : vector<1x1x128xf32> to vector<1x128xf32>
    %c1_3 = arith.constant 1 : index
    %c0_4 = arith.constant 0 : index
    %c0_5 = arith.constant 0 : index
    %6 = vector.load %arg2[%c1_3, %c0_4, %c0_5] : memref<4x1x128xf32, #tpu.memory_space<vmem>>, vector<1x1x128xf32>
    %7 = vector.shape_cast %6 : vector<1x1x128xf32> to vector<1x128xf32>
    %c2_6 = arith.constant 2 : index
    %c0_7 = arith.constant 0 : index
    %c0_8 = arith.constant 0 : index
    %8 = vector.load %arg2[%c2_6, %c0_7, %c0_8] : memref<4x1x128xf32, #tpu.memory_space<vmem>>, vector<1x1x128xf32>
    %9 = vector.shape_cast %8 : vector<1x1x128xf32> to vector<1x128xf32>
    %c3_9 = arith.constant 3 : index
    %c0_10 = arith.constant 0 : index
    %c0_11 = arith.constant 0 : index
    %10 = vector.load %arg2[%c3_9, %c0_10, %c0_11] : memref<4x1x128xf32, #tpu.memory_space<vmem>>, vector<1x1x128xf32>
    %11 = vector.shape_cast %10 : vector<1x1x128xf32> to vector<1x128xf32>
    %12 = arith.mulf %5, %5 : vector<1x128xf32>
    %13 = arith.mulf %7, %7 : vector<1x128xf32>
    %14 = arith.addf %12, %13 : vector<1x128xf32>
    %15 = arith.mulf %9, %9 : vector<1x128xf32>
    %16 = arith.mulf %11, %11 : vector<1x128xf32>
    %17 = arith.addf %15, %16 : vector<1x128xf32>
    %18 = arith.addf %14, %17 : vector<1x128xf32>
    %cst = arith.constant 2.000000e+00 : f32
    %19 = vector.broadcast %cst : f32 to vector<1x128xf32>
    %20 = arith.subf %18, %19 : vector<1x128xf32>
    %21 = arith.mulf %5, %11 : vector<1x128xf32>
    %22 = arith.mulf %7, %9 : vector<1x128xf32>
    %23 = arith.subf %21, %22 : vector<1x128xf32>
    %cst_12 = arith.constant 1.000000e+00 : f32
    %24 = vector.broadcast %cst_12 : f32 to vector<1x128xf32>
    %25 = arith.subf %23, %24 : vector<1x128xf32>
    %26 = vector.broadcast %2 : f32 to vector<1x128xf32>
    %27 = arith.mulf %26, %20 : vector<1x128xf32>
    %28 = vector.broadcast %0 : f32 to vector<1x128xf32>
    %29 = arith.addf %28, %27 : vector<1x128xf32>
    %30 = arith.mulf %20, %29 : vector<1x128xf32>
    %31 = vector.broadcast %1 : f32 to vector<1x128xf32>
    %32 = arith.mulf %31, %25 : vector<1x128xf32>
    %33 = vector.broadcast %3 : f32 to vector<1x128xf32>
    %34 = arith.addf %33, %32 : vector<1x128xf32>
    %35 = arith.mulf %25, %34 : vector<1x128xf32>
    %36 = arith.addf %30, %35 : vector<1x128xf32>
    %c0_13 = arith.constant 0 : index
    %c0_14 = arith.constant 0 : index
    %37 = vector.load %arg3[%c0_13, %c0_14] : memref<1x128xf32, #tpu.memory_space<vmem>>, vector<1x128xf32>
    tpu.vector_store %arg3[%c0_13, %c0_14], %36 {strides = array<i32>} : memref<1x128xf32, #tpu.memory_space<vmem>>, vector<1x128xf32>,
    return
  }
  func.func @transform_0(%arg0: i32, %arg1: memref<4xf32, #tpu.memory_space<smem>>) -> (i32, i32, i32) {
    %c0_i32 = arith.constant 0 : i32
    %c0_i32_0 = arith.constant 0 : i32
    %c0_i32_1 = arith.constant 0 : i32
    return %c0_i32, %arg0, %c0_i32_0 : i32, i32, i32
  }
  func.func @transform_1(%arg0: i32, %arg1: memref<4xf32, #tpu.memory_space<smem>>) -> (i32, i32) {
    %c0_i32 = arith.constant 0 : i32
    %c0_i32_0 = arith.constant 0 : i32
    return %arg0, %c0_i32 : i32, i32
  }
}

</mosaic_0001>

<bundles_post_ra>
// kernel: tpu_custom_call.1
= control target key start
LH: loop header
LB: loop body
LE: loop exit
PB: predicated region body
PF: predicated region fallthrough
CT: control target
= control target key end

     0   :  { %s204_s0 = inlined_call_operand.hbm [shape: f32[4], index: 0, kind: input, shape index: {}]   ;;  %s205_s1 = inlined_call_operand.hbm [shape: f32[4,1,128], index: 1, kind: input, shape index: {}]   ;;  %s206_s2 = inlined_call_operand.hbm [shape: f32[1,128], index: 2, kind: output, shape index: {}]  }
   0x1   :  { %s88_s11 = scalar_lea.hbm %s204_s0, 16 }
   0x2   :  { %p89_p0 = scmp.ne.s32.totalorder %s204_s0, %s88_s11  ;;  %p92_p1 = scmp.lt.u32.totalorder %s88_s11, %s204_s0 }
   0x4   :  { %p94_p2 = pnand %p92_p1, %p89_p0 }
   0x6   :  { %97 = shalt.err (!%p94_p2)  }
   0x7   :  { %s148_s16 = smov [#allocation3]  }
   0x8   :  { %8 = dma.hbm_to_smem %s204_s0, 16, %s148_s16, [#allocation2] }
   0x9   :  { %142 = dma.done.wait [#allocation2], 16 }
   0xa   :  { %143 = vsyncadd [#allocation2], 4294967280 }
   0xb   :  { %10 = sfence }
   0xc   :  { %11 = vsyncpa [#allocation5], 0 }
   0xd   :  { %12 = vsyncpa [#allocation6], 0  ;;  %s149_s19 = smov [#allocation4]   ;;  %s98_s23 = scalar_lea.hbm %s205_s1, 64 }
   0xe   :  { %s18_s20 = sshll.u32 %s149_s19, 4  ;;  %p99_p3 = scmp.ne.s32.totalorder %s205_s1, %s98_s23  ;;  %s19_s20 = int_to_ptr.vmem [resolvable:$true] %s18_s20 }
   0xf   :  { %p102_p4 = scmp.lt.u32.totalorder %s98_s23, %s205_s1 }
  0x11   :  { %p104_p5 = pnand %p102_p4, %p99_p3 }
  0x13   :  { %107 = shalt.err (!%p104_p5)
}
  0x14   :  { %s108_s0 = scalar_lea.vmem %s19_s20, 64  ;;  %p113_p7 = scmp.lt.s32.totalorder %s19_s20, %s19_s20 }
  0x15   :  { %p109_p6 = scmp.ne.s32.totalorder %s19_s20, %s108_s0  ;;  %p114_p8 = scmp.lt.s32.totalorder %s108_s0, %s108_s0 }
  0x17   :  { %p115_p9 = por %p114_p8, %p113_p7 }
  0x19   :  { %p116_p10 = pnand %p115_p9, %p109_p6 }
  0x1b   :  { %119 = shalt.err (!%p116_p10)
}
  0x1c   :  { %s150_s28 = smov 16   ;;  %s151_s29 = smov 1  }
  0x1d   :  { %24 = dma.hbm_to_vmem [thread:$0]  %s205_s1, 64, %s19_s20, [#allocation5], %s150_s28, %s150_s28, %s151_s29  }
  0x1e   :  { %144 = dma.done.wait [#allocation5], 64  }
  0x1f   :  { %145 = vsyncadd [#allocation5], 4294967232  ;;  %s78_s4 = sld [smem:[#allocation3 + $0x1]]  ;;  %s79_s5 = sld [smem:[#allocation3 + $0x2]]  ;;  %v32_v0 = vld [vmem:[#allocation4] sm:$0x1] }
  0x20   :  { %s80_s6 = sld [smem:[#allocation3 + $0x3]]  ;;  %v34_v1 = vld [vmem:[#allocation4 + $0x1] sm:$0x1]  ;;  %v36_v2 = vld [vmem:[#allocation4 + $0x2] sm:$0x1]  ;;  %s28_s7 = sld [smem:[#allocation3]]  ;;  %v39_v4 = vmul.f32 %v32_v0, %v32_v0 }
  0x21   :  { %v38_v3 = vld [vmem:[#allocation4 + $0x3] sm:$0x1]  ;;  %v40_v5 = vmul.f32 %v34_v1, %v34_v1  ;;  %v42_v6 = vmul.f32 %v36_v2, %v36_v2  ;;  %v48_v7 = vmul.f32 %v36_v2, %v34_v1  ;;  %s152_s1 = smov [#allocation7]  }
  0x22   :  { %v43_v8 = vmul.f32 %v38_v3, %v38_v3  ;;  %v47_v9 = vmul.f32 %v38_v3, %v32_v0  ;;  %s69_s8 = sshll.u32 %s152_s1, 4  ;;  %s70_s8 = int_to_ptr.vmem [resolvable:$true] %s69_s8 }
  0x23   :  { %v41_v10 = vadd.f32 %v40_v5, %v39_v4  ;;  %s120_s9 = scalar_lea.vmem %s70_s8, 16  ;;  %s124_s10 = scalar_lea.vmem %s70_s8, 32 }
  0x24   :  { %v44_v11 = vadd.f32 %v43_v8, %v42_v6  ;;  %v49_v12 = vsub.f32 %v47_v9, %v48_v7  ;;  %p121_p11 = scmp.ne.s32.totalorder %s70_s8, %s120_s9  ;;  %p125_p12 = scmp.lt.s32.totalorder %s70_s8, %s70_s8 }
  0x25   :  { %v56_v13 = vstv %s78_s4  ;;  %v51_v16 = vstv %s79_s5  ;;  %p126_p13 = scmp.lt.s32.totalorder %s124_s10, %s120_s9 }
  0x26   :  { %v45_v14 = vadd.f32 %v44_v11, %v41_v10  ;;  %v82_v15 = vadd.f32 -1.0, %v49_v12  ;;  %v58_v17 = vstv %s80_s6  ;;  %v53_v20 = vstv %s28_s7 }
  0x27   :  { %p127_p0 = por %p126_p13, %p125_p12 }
  0x28   :  { %v81_v18 = vadd.f32 -2.0, %v45_v14  ;;  %v57_v19 = vmul.f32 %v82_v15, %v56_v13 }
  0x29   :  { %p128_p1 = pnand %p127_p0, %p121_p11 }
  0x2a   :  { %v52_v21 = vmul.f32 %v81_v18, %v51_v16  ;;  %v59_v22 = vadd.f32 %v58_v17, %v57_v19 }
  0x2c   :  { %v54_v23 = vadd.f32 %v53_v20, %v52_v21  ;;  %v60_v24 = vmul.f32 %v82_v15, %v59_v22 }
  0x2e   :  { %v55_v25 = vmul.f32 %v81_v18, %v54_v23 }
  0x30   :  { %v61_v26 = vadd.f32 %v60_v24, %v55_v25 }
  0x32   :  { %62 = vst [vmem:[#allocation7] sm:$0x1] %v61_v26 }
  0x33   :  { %131 = shalt.err (!%p128_p1)
}
  0x34   :  { %s132_s13 = scalar_lea.hbm %s206_s2, 16 }
  0x35   :  { %p133_p2 = scmp.ne.s32.totalorder %s206_s2, %s132_s13  ;;  %p136_p3 = scmp.lt.u32.totalorder %s132_s13, %s206_s2 }
  0x37   :  { %p138_p4 = pnand %p136_p3, %p133_p2 }
  0x39   :  { %141 = shalt.err (!%p138_p4)
}
  0x3a   :  { %72 = dma.vmem_to_hbm [thread:$0]  %s70_s8, 16, %s206_s2, [#allocation6]  }
  0x3b   :  { %146 = dma.done.wait [#allocation6], 16  }
  0x3c   :  { %147 = vsyncadd [#allocation6], 4294967280 }
  0x3d   :  { %76 = vsyncpa [#allocation5], 1 }
  0x3e   :  { %77 = vsyncpa [#allocation6], 1 }

</bundles_post_ra>
